<compile_context>
chip_gen: v7x
topology: tpu7x:2x2x1
jax: 0.10.0
libtpu: 0.0.40
codegen_flags: <defaults>
</compile_context>

<pallas_src>
import jax
import jax.numpy as jnp
from jax.experimental import pallas as pl
from jax.experimental.pallas import tpu as pltpu


def _patch_embed_kernel(p_ref, wt_ref, add_ref, cls_ref, out_ref):
    # p_ref:   (L, K)    patches for this batch element
    # wt_ref:  (K, E)    transposed linear weight (VMEM-resident across grid)
    # add_ref: (L, E)    bias + pos_emb[1:]       (VMEM-resident across grid)
    # cls_ref: (1, E)    cls_token + pos_emb[0]   (VMEM-resident across grid)
    # out_ref: (L+1, E)  final rows for this batch element
    y = jnp.dot(p_ref[...], wt_ref[...], preferred_element_type=jnp.float32)
    out_ref[0:1, :] = cls_ref[...].astype(out_ref.dtype)
    out_ref[1:, :] = (y + add_ref[...]).astype(out_ref.dtype)


def manual_patch_embedding(x, weight, bias, cls_token, pos_emb, patch_size):
    """x: (B, C, H, W) f32. weight: (E, C*p*p). Returns (B, L+1, E)."""
    B, C, H, W = x.shape
    p = patch_size
    Hp, Wp = H // p, W // p
    L = Hp * Wp
    K = C * p * p
    E = weight.shape[0]

    # Reproduce nn.Unfold + permute: per-patch feature ordering is (c, kh, kw).
    patches = x.reshape(B, C, Hp, p, Wp, p)
    patches = jnp.transpose(patches, (0, 2, 4, 1, 3, 5)).reshape(B, L, K)

    wt = weight.T                                    # (K, E)
    pos = pos_emb.reshape(L + 1, E)
    add_rows = bias[None, :] + pos[1:, :]            # (L, E)   batch-invariant
    cls_row = cls_token.reshape(1, E) + pos[0:1, :]  # (1, E)   batch-invariant

    out = pl.pallas_call(
        _patch_embed_kernel,
        out_shape=jax.ShapeDtypeStruct((B, L + 1, E), jnp.float32),
        grid=(B,),
        in_specs=[
            # One batch element of patches per grid step (leading dim squeezed).
            pl.BlockSpec((None, L, K), lambda b: (b, 0, 0)),
            # Weight / additive terms: constant index_map -> stay resident in VMEM.
            pl.BlockSpec((K, E), lambda b: (0, 0)),
            pl.BlockSpec((L, E), lambda b: (0, 0)),
            pl.BlockSpec((1, E), lambda b: (0, 0)),
        ],
        out_specs=pl.BlockSpec((None, L + 1, E), lambda b: (b, 0, 0)),
        compiler_params=pltpu.CompilerParams(
            dimension_semantics=("parallel",),      # 2-TC sharding on v7x
            vmem_limit_bytes=64 * 1024 * 1024,
        ),
    )(patches, wt, add_rows, cls_row)

    return out                                       # (B, L+1, E)


def _reference(x, weight, bias, cls_token, pos_emb, patch_size):
    B, C, H, W = x.shape
    p = patch_size
    Hp, Wp = H // p, W // p
    L = Hp * Wp
    K = C * p * p
    patches = x.reshape(B, C, Hp, p, Wp, p)
    patches = jnp.transpose(patches, (0, 2, 4, 1, 3, 5)).reshape(B, L, K)
    y = patches @ weight.T + bias                        # (B, L, E)
    cls = jnp.broadcast_to(cls_token, (B, 1, weight.shape[0]))
    out = jnp.concatenate([cls, y], axis=1) + pos_emb
    return out


if __name__ == "__main__":
    # Module config: input_shape=(C=4, H=16, W=16), embedding_dimension=32, patch_size=4
    B, C, H, W = 2, 4, 16, 16
    patch_size = 4
    E = 32
    L = (H // patch_size) * (W // patch_size)
    K = C * patch_size * patch_size

    key = jax.random.PRNGKey(0)
    k_x, k_w, k_b, k_cls, k_pos = jax.random.split(key, 5)

    x = jax.random.normal(k_x, (B, C, H, W), dtype=jnp.float32)
    weight = jax.random.normal(k_w, (E, K), dtype=jnp.float32) * 0.02
    bias = jax.random.normal(k_b, (E,), dtype=jnp.float32) * 0.02
    cls_token = jax.random.uniform(k_cls, (1, 1, E), dtype=jnp.float32)
    pos_emb = jax.random.uniform(k_pos, (1, L + 1, E), dtype=jnp.float32)

    out = manual_patch_embedding(x, weight, bias, cls_token, pos_emb, patch_size)
    out = jax.block_until_ready(out)

    ref = _reference(x, weight, bias, cls_token, pos_emb, patch_size)
    assert out.shape == (B, L + 1, E)
    assert jnp.allclose(out, ref, atol=1e-4, rtol=1e-4)

    print("KERNEL_OK")
</pallas_src>

<mosaic_0001>
module attributes {stable_mosaic.version = 11 : i64} {
  func.func @_patch_embed_kernel(%arg0: i32, %arg1: memref<1x16x64xf32, #tpu.memory_space<vmem>>, %arg2: memref<64x32xf32, #tpu.memory_space<vmem>>, %arg3: memref<16x32xf32, #tpu.memory_space<vmem>>, %arg4: memref<1x32xf32, #tpu.memory_space<vmem>>, %arg5: memref<1x17x32xf32, #tpu.memory_space<vmem>>) attributes {dimension_semantics = [#tpu.dimension_semantics<parallel>], iteration_bounds = array<i64: 2>, scalar_prefetch = 0 : i64, scratch_operands = 0 : i64, tpu.core_type = #tpu.core_type<tc>, window_params = [{transform_indices = @transform_0, window_bounds = array<i64: 1, 16, 64>}, {pipeline_mode = #tpu.pipeline_mode<synchronous>, transform_indices = @transform_1, window_bounds = array<i64: 64, 32>}, {pipeline_mode = #tpu.pipeline_mode<synchronous>, transform_indices = @transform_2, window_bounds = array<i64: 16, 32>}, {pipeline_mode = #tpu.pipeline_mode<synchronous>, transform_indices = @transform_3, window_bounds = array<i64: 1, 32>}, {transform_indices = @transform_4, window_bounds = array<i64: 1, 17, 32>}]} {
    %c0 = arith.constant 0 : index
    %c0_0 = arith.constant 0 : index
    %c0_1 = arith.constant 0 : index
    %0 = vector.load %arg1[%c0, %c0_0, %c0_1] : memref<1x16x64xf32, #tpu.memory_space<vmem>>, vector<1x16x64xf32>
    %1 = vector.shape_cast %0 : vector<1x16x64xf32> to vector<16x64xf32>
    %c0_2 = arith.constant 0 : index
    %c0_3 = arith.constant 0 : index
    %2 = vector.load %arg2[%c0_2, %c0_3] : memref<64x32xf32, #tpu.memory_space<vmem>>, vector<64x32xf32>
    %cst = arith.constant dense<0.000000e+00> : vector<16x32xf32>
    %3 = tpu.matmul %1, %2, %cst {dimension_numbers = #tpu.dot_dimension_numbers<[1], [0], [0], [1], [0, 0, 1, 1], [], []>} : vector<16x64xf32>, vector<64x32xf32>, vector<16x32xf32> -> vector<16x32xf32>
    %c0_4 = arith.constant 0 : index
    %c0_5 = arith.constant 0 : index
    %4 = vector.load %arg4[%c0_4, %c0_5] : memref<1x32xf32, #tpu.memory_space<vmem>>, vector<1x32xf32>
    %c0_6 = arith.constant 0 : index
    %c0_7 = arith.constant 0 : index
    %c0_8 = arith.constant 0 : index
    %5 = vector.load %arg5[%c0_6, %c0_7, %c0_8] : memref<1x17x32xf32, #tpu.memory_space<vmem>>, vector<1x1x32xf32>
    %6 = vector.shape_cast %5 : vector<1x1x32xf32> to vector<1x32xf32>
    %7 = vector.shape_cast %4 : vector<1x32xf32> to vector<1x1x32xf32>
    tpu.vector_store %arg5[%c0_6, %c0_7, %c0_8], %7 {strides = array<i32>} : memref<1x17x32xf32, #tpu.memory_space<vmem>>, vector<1x1x32xf32>,
    %c0_9 = arith.constant 0 : index
    %c0_10 = arith.constant 0 : index
    %8 = vector.load %arg3[%c0_9, %c0_10] : memref<16x32xf32, #tpu.memory_space<vmem>>, vector<16x32xf32>
    %9 = arith.addf %3, %8 : vector<16x32xf32>
    %c0_11 = arith.constant 0 : index
    %c1 = arith.constant 1 : index
    %c0_12 = arith.constant 0 : index
    %10 = vector.load %arg5[%c0_11, %c1, %c0_12] : memref<1x17x32xf32, #tpu.memory_space<vmem>>, vector<1x16x32xf32>
    %11 = vector.shape_cast %10 : vector<1x16x32xf32> to vector<16x32xf32>
    %12 = vector.shape_cast %9 : vector<16x32xf32> to vector<1x16x32xf32>
    tpu.vector_store %arg5[%c0_11, %c1, %c0_12], %12 {strides = array<i32>} : memref<1x17x32xf32, #tpu.memory_space<vmem>>, vector<1x16x32xf32>,
    return
  }
  func.func @transform_0(%arg0: i32) -> (i32, i32, i32) {
    %c0_i32 = arith.constant 0 : i32
    %c0_i32_0 = arith.constant 0 : i32
    %c0_i32_1 = arith.constant 0 : i32
    return %arg0, %c0_i32, %c0_i32_0 : i32, i32, i32
  }
  func.func @transform_1(%arg0: i32) -> (i32, i32) {
    %c0_i32 = arith.constant 0 : i32
    %c0_i32_0 = arith.constant 0 : i32
    %c0_i32_1 = arith.constant 0 : i32
    return %c0_i32, %c0_i32_0 : i32, i32
  }
  func.func @transform_2(%arg0: i32) -> (i32, i32) {
    %c0_i32 = arith.constant 0 : i32
    %c0_i32_0 = arith.constant 0 : i32
    %c0_i32_1 = arith.constant 0 : i32
    return %c0_i32, %c0_i32_0 : i32, i32
  }
  func.func @transform_3(%arg0: i32) -> (i32, i32) {
    %c0_i32 = arith.constant 0 : i32
    %c0_i32_0 = arith.constant 0 : i32
    %c0_i32_1 = arith.constant 0 : i32
    return %c0_i32, %c0_i32_0 : i32, i32
  }
  func.func @transform_4(%arg0: i32) -> (i32, i32, i32) {
    %c0_i32 = arith.constant 0 : i32
    %c0_i32_0 = arith.constant 0 : i32
    %c0_i32_1 = arith.constant 0 : i32
    return %arg0, %c0_i32, %c0_i32_0 : i32, i32, i32
  }
}

</mosaic_0001>

<bundles_post_ra>
// kernel: tpu_custom_call.1
= control target key start
LH: loop header
LB: loop body
LE: loop exit
PB: predicated region body
PF: predicated region fallthrough
CT: control target
= control target key end

     0   :  { %9 = vsyncpa [#allocation3], 0  ;;  %s1121_s0 = inlined_call_operand.hbm [shape: f32[2,16,64], index: 0, kind: input, shape index: {}]   ;;  %s1122_s1 = inlined_call_operand.hbm [shape: f32[64,32], index: 1, kind: input, shape index: {}]   ;;  %s1123_s2 = inlined_call_operand.hbm [shape: f32[16,32], index: 2, kind: input, shape index: {}]   ;;  %s1124_s3 = inlined_call_operand.hbm [shape: f32[1,32], index: 3, kind: input, shape index: {}]   ;;  %s1125_s4 = inlined_call_operand.hbm [shape: f32[2,17,32], index: 4, kind: output, shape index: {}]  }
   0x1   :  { %11 = vsyncpa [#allocation3 + $0x1], 0 }
   0x2   :  { %12 = vsyncpa [#allocation6], 0 }
   0x3   :  { %13 = vsyncpa [#allocation9], 0 }
   0x4   :  { %14 = vsyncpa [#allocation4], 0 }
   0x5   :  { %16 = vsyncpa [#allocation4 + $0x1], 0  ;;  %s846_s15 = smov 0   ;;  %s848_s16 = smov 0  }
   0x6   :  { %s850_s17 = smov 0   ;;  %s852_s18 = smov 0  }
   0x7 LB: > { %s867_s19 = sadd.s32 4294967295, %s810_s18   ;;  %s474_s20 = sadd.s32 4294967294, %s810_s18   ;;  %s810_s18 = sphi %s852_s18, %s1148_s18   ;;  %s806_s17 = sphi %s850_s17, %s1147_s17   ;;  %s802_s16 = sphi %s848_s16, %s1146_s16   ;;  %s798_s15 = sphi %s846_s15, %s1145_s15  }
   0x8   : > { %p42_p0 = scmp.ne.s32.totalorder %s802_s16, %s798_s15  ;;  %p1126_p1 = scmp.eq.s32.totalorder %s867_s19, 0 }
   0x9   : > { %p135_p3 = scmp.eq.s32.totalorder %s474_s20, 1  ;;  %p475_p5 = scmp.ge.s32.totalorder %s810_s18, 1 }
   0xa   : > { %p876_p4 = por %p1126_p1, %p42_p0  ;;  %p142_p7 = scmp.lt.s32.totalorder %s810_s18, 3 }
   0xb   : > { %p881_p6 = por %p135_p3, %p42_p0  ;;  %s812_s24 = smov [#allocation5]  }
   0xc   : > { %s1129_s21 = scalar_select %p876_p4, 1, 0 }
   0xd   : > { %s1130_s22 = scalar_select %p881_p6, 1, 0 }
   0xe   : > { %p886_p8 = pnand %p475_p5, %p142_p7  ;;  %s154_s25 = sshll.u32 %s812_s24, 4  ;;  %s890_s25 = int_to_ptr.vmem [resolvable:$true] %s154_s25 }
   0xf   : > { %s813_s27 = smov [#allocation7]   ;;  %s814_s29 = smov [#allocation8]  }
  0x10   : > { %s1131_s23 = scalar_select %p886_p8, 1, 0 }
  0x11   : > { %p557_p9 = pneg %p886_p8  ;;  %s167_s28 = sshll.u32 %s813_s27, 4  ;;  %s901_s28 = int_to_ptr.vmem [resolvable:$true] %s167_s28 }
  0x12   : > { %s903_s30 = sshll.u32 %s814_s29, 4  ;;  %s622_s7 = scalar_lea.hbm %s1122_s1, 1024  ;;  %s182_s30 = int_to_ptr.vmem [resolvable:$true] %s903_s30 }
  0x13   : > { %p897_p11 = pnand %p557_p9, %p1126_p1  ;;  %p623_p12 = scmp.ne.s32.totalorder %s1122_s1, %s622_s7 }
  0x14   : > { %p629_p5 = scmp.lt.u32.totalorder %s622_s7, %s1122_s1 }
  0x15   : > { %p913_p13 = pneg %p897_p11 }
  0x17   : > { %p625_p0 = pnand %p913_p13, %p623_p12 }
  0x19   : > { %p626_p3 = pneg %p625_p0 }
  0x1b   : > { %p631_p7 = pnand %p629_p5, %p626_p3 }
  0x1d   : > { %634 = shalt.err (!%p631_p7)
}
  0x1e   : > { %s635_s13 = scalar_lea.vmem %s890_s25, 1024  ;;  %p643_p2 = scmp.lt.s32.totalorder %s890_s25, %s890_s25 }
  0x1f   : > { %p636_p9 = scmp.ne.s32.totalorder %s890_s25, %s635_s13  ;;  %p644_p6 = scmp.lt.s32.totalorder %s635_s13, %s635_s13 }
  0x21   : > { %p638_p10 = pnand %p636_p9, %p913_p13  ;;  %p645_p12 = por %p644_p6, %p643_p2 }
  0x23   : > { %p639_p1 = pneg %p638_p10 }
  0x25   : > { %p646_p0 = pnand %p645_p12, %p639_p1 }
  0x27   : > { %649 = shalt.err (!%p646_p0)
}
  0x28   : > { %s815_s14 = smov 128   ;;  %s816_s20 = smov 8  }
  0x29   : > { %560 = dma.hbm_to_vmem [thread:$0]  (!%p897_p11), %s1122_s1, 1024, %s890_s25, [#allocation6], %s815_s14, %s815_s14, %s816_s20  }
  0x2a   : > { %s650_s6 = scalar_lea.hbm %s1123_s2, 256 }
  0x2b   : > { %p651_p1 = scmp.ne.s32.totalorder %s1123_s2, %s650_s6  ;;  %p657_p10 = scmp.lt.u32.totalorder %s650_s6, %s1123_s2 }
  0x2d   : > { %p653_p2 = pnand %p651_p1, %p913_p13 }
  0x2f   : > { %p654_p6 = pneg %p653_p2 }
  0x31   : > { %p659_p3 = pnand %p657_p10, %p654_p6 }
  0x33   : > { %662 = shalt.err (!%p659_p3)
}
  0x34   : > { %s663_s25 = scalar_lea.vmem %s901_s28, 256  ;;  %p671_p12 = scmp.lt.s32.totalorder %s901_s28, %s901_s28 }
  0x35   : > { %p664_p5 = scmp.ne.s32.totalorder %s901_s28, %s663_s25  ;;  %p672_p0 = scmp.lt.s32.totalorder %s663_s25, %s663_s25 }
  0x37   : > { %p666_p7 = pnand %p664_p5, %p913_p13  ;;  %p673_p1 = por %p672_p0, %p671_p12 }
  0x39   : > { %p667_p9 = pneg %p666_p7 }
  0x3b   : > { %p674_p2 = pnand %p673_p1, %p667_p9 }
  0x3d   : > { %677 = shalt.err (!%p674_p2)
}
  0x3e   : > { %563 = dma.hbm_to_vmem [thread:$0]  (!%p897_p11), %s1123_s2, 256, %s901_s28, [#allocation6], %s815_s14, %s815_s14, %s816_s20  }
  0x3f   : > { %s678_s29 = scalar_lea.hbm %s1124_s3, 16 }
  0x40   : > { %p679_p6 = scmp.ne.s32.totalorder %s1124_s3, %s678_s29  ;;  %p685_p5 = scmp.lt.u32.totalorder %s678_s29, %s1124_s3 }
  0x42   : > { %p681_p10 = pnand %p679_p6, %p913_p13 }
  0x44   : > { %p682_p3 = pneg %p681_p10 }
  0x46   : > { %p687_p7 = pnand %p685_p5, %p682_p3 }
  0x48   : > { %690 = shalt.err (!%p687_p7)
}
  0x49   : > { %s691_s9 = scalar_lea.vmem %s182_s30, 16  ;;  %s698_s28 = scalar_lea.vmem %s182_s30, 32 }
  0x4a   : > { %p692_p9 = scmp.ne.s32.totalorder %s182_s30, %s691_s9  ;;  %p699_p1 = scmp.lt.s32.totalorder %s182_s30, %s182_s30 }
  0x4b   : > { %p700_p2 = scmp.lt.s32.totalorder %s698_s28, %s691_s9 }
  0x4c   : > { %p694_p12 = pnand %p692_p9, %p913_p13 }
  0x4d   : > { %p701_p4 = por %p700_p2, %p699_p1 }
  0x4e   : > { %p695_p0 = pneg %p694_p12 }
  0x50   : > { %p702_p8 = pnand %p701_p4, %p695_p0 }
  0x52   : > { %705 = shalt.err (!%p702_p8)
}
  0x53   : > { %566 = dma.hbm_to_vmem [thread:$0]  (!%p897_p11), %s1124_s3, 16, %s182_s30, [#allocation9]  }
  0x54   : > { %s983_s10 = sadd.s32 1, %s810_s18   ;;  %s29_s26 = sadd.s32 1, %s806_s17 }
  0x55   : > { %s26_s12 = ssub.s32 %s810_s18, %s983_s10  ;;  %p36_p8 = scmp.ne.s32.totalorder %s806_s17, %s802_s16 }
  0x56   : > { %p27_p4 = scmp.eq.s32.totalorder %s26_s12, 0  ;;  %p37_p13 = scmp.eq.s32.totalorder %s810_s18, 0 }
  0x57   : > { %p578_p6 = scmp.lt.s32.totalorder %s810_s18, 2  ;;  %p1134_p3 = scmp.eq.s32.totalorder %s867_s19, 1 }
  0x58   : > { %s993_s13 = scalar_select %p27_p4, %s806_s17, %s29_s26  }
  0x59   : > { %p38_p10 = por %p37_p13, %p36_p8  ;;  %p997_p5 = por %p1134_p3, %p36_p8 }
  0x5a   : > { %s192_s27 = sand.u32 1, %s806_s17   ;;  %s493_s29 = sshll.u32 %s810_s18, 8 }
  0x5b   : > { %s480_s30 = sshll.u32 %s192_s27, 4  ;;  %s1006_s7 = scalar_lea.hbm %s1121_s0, %s493_s29 }
  0x5c   : > { %s196_s8 = scalar_lea.vmem [#allocation2], %s480_s30  ;;  %p1008_p11 = pnand %p578_p6, %p38_p10 }
  0x5d   : > { %s203_s9 = sshll.u32 %s196_s8, 4  ;;  %s1014_s11 = scalar_lea.sflag [#allocation3], %s192_s27  ;;  %s1012_s9 = int_to_ptr.vmem [resolvable:$true] %s203_s9 }
  0x5e   : > { %s706_s25 = scalar_lea.hbm %s1006_s7, 256  ;;  %p708_p9 = pneg %p1008_p11 }
  0x5f   : > { %p707_p7 = scmp.ne.s32.totalorder %s1006_s7, %s706_s25  ;;  %s711_s29 = scalar_lea.hbm %s1121_s0, 512 }
  0x60   : > { %p712_p1 = scmp.lt.u32.totalorder %s1006_s7, %s1121_s0  ;;  %p713_p2 = scmp.lt.u32.totalorder %s711_s29, %s706_s25 }
  0x61   : > { %p709_p12 = pnand %p708_p9, %p707_p7  ;;  %p715_p8 = scmp.lt.u32.totalorder %s706_s25, %s1006_s7 }
  0x62   : > { %p714_p4 = por %p713_p2, %p712_p1 }
  0x63   : > { %p710_p0 = pneg %p709_p12 }
  0x64   : > { %p716_p13 = por %p715_p8, %p714_p4 }
  0x66   : > { %p717_p6 = pnand %p716_p13, %p710_p0 }
  0x68   : > { %720 = shalt.err (!%p717_p6)
}
  0x69   : > { %s721_s27 = scalar_lea.vmem %s1012_s9, 256  ;;  %s817_s6 = smov [#allocation2]  }
  0x6a   : > { %p722_p10 = scmp.ne.s32.totalorder %s1012_s9, %s721_s27  ;;  %s726_s8 = sshll.u32 %s817_s6, 4  ;;  %s727_s8 = int_to_ptr.vmem [resolvable:$false] %s726_s8 }
  0x6b   : > { %s728_s12 = scalar_lea.vmem %s727_s8, 512  ;;  %p729_p12 = scmp.lt.s32.totalorder %s1012_s9, %s727_s8 }
  0x6c   : > { %p724_p3 = pnand %p722_p10, %p708_p9  ;;  %p730_p1 = scmp.lt.s32.totalorder %s728_s12, %s721_s27 }
  0x6e   : > { %p725_p7 = pneg %p724_p3  ;;  %p731_p2 = por %p730_p1, %p729_p12 }
  0x70   : > { %p732_p4 = pnand %p731_p2, %p725_p7 }
  0x72   : > { %735 = shalt.err (!%p732_p4)
}
  0x73   : > { %570 = dma.hbm_to_vmem [thread:$0]  (!%p1008_p11), %s1006_s7, 256, %s1012_s9, %s1014_s11, %s815_s14, %s815_s14, %s816_s20  }
  0x74   : > { %p1137_p9 = scmp.ne.s32.totalorder %s1131_s23, 0 }
  0x75   : > { %s1048_s25 = sand.u32 (!%p1137_p9), 1, %s802_s16   ;;  %p1138_p0 = scmp.ne.s32.totalorder (!%p1137_p9), %s1129_s21, 0 }
  0x76   : > { %215 = sbr.rel (%p1137_p9) target bundleno = 382 (0x17e), region = 36  ;;  %s484_s26 = sshll.u32 (!%p1137_p9), %s1048_s25, 4 }
  0x77   : > { %s218_s29 = scalar_lea.sflag (!%p1137_p9), [#allocation3], %s1048_s25  ;;  %s1052_s30 = scalar_lea.vmem (!%p1137_p9), [#allocation2], %s484_s26 }
  0x7d   : > { %781 = dma.done.wait (%p1138_p0), %s218_s29, 256  }
  0x7e   : > { %783 = vsyncadd (%p1138_p0), %s218_s29, 4294967040  ;;  %p1139_p11 = scmp.eq.s32.totalorder %s867_s19, 0 }
  0x80   : > { %785 = dma.done.wait (%p1139_p11), [#allocation6], 1280   ;;  %p1140_p8 = pmov %p1139_p11 }
  0x82   : > { %787 = vsyncadd (%p1140_p8), [#allocation6], 4294966016  ;;  %p1141_p13 = pmov %p1140_p8 }
  0x83   : > { %p1142_p6 = pmov %p1140_p8 }
  0x84   : > { %789 = dma.done.wait (%p1141_p13), [#allocation9], 16  }
  0x85   : > { %791 = vsyncadd (%p1142_p6), [#allocation9], 4294967280  ;;  %s539_s23 = smul.u32 24, %s1048_s25  ;;  %v260_v0 = vld [vmem:[#allocation5] sm:$0xff]  ;;  %v261_v1 = vld [vmem:[#allocation5 + $0x8] sm:$0xff]  ;;  %vm273_vm0 = vcmask 523264  }
  0x86   : > { %v262_v2 = vld [vmem:[#allocation5 + $0x10] sm:$0xff]  ;;  %v523_v3 = vpack.c.bf16 %v261_v1, %v260_v0  ;;  %v263_v4 = vld [vmem:[#allocation5 + $0x18] sm:$0xff]  ;;  %vm269_vm1 = vcmask 253952   ;;  %v264_v6 = vld [vmem:[#allocation5 + $0x20] sm:$0xff]  ;;  %s540_s20 = smul.u32 384, %s867_s19  ;;  %vm355_vm2 = vcmask 261120  }
  0x87   : > { %v527_v5 = vpack.c.bf16 %v263_v4, %v262_v2  ;;  %v265_v7 = vld [vmem:[#allocation5 + $0x28] sm:$0xff]  ;;  %v258_v8 = vld [vmem:[%s1052_s30] sm:$0xff]  ;;  %s257_s21 = scalar_lea.vmem [#allocation10], %s539_s23  ;;  %v267_v12 = vld [vmem:[#allocation5 + $0x38] sm:$0xff]  ;;  %s359_s19 = scalar_lea.sflag [#allocation4], %s1048_s25 }
  0x88   : > { %524 = vmatprep.subr.bf16.mxu0 %v523_v3  ;;  %520 = vmatprep.mubr.msk.f32.mxu0 %vm273_vm0, %v258_v8  ;;  %v268_v9 = vld [vmem:[#allocation8] sm:$0x1]  ;;  %v531_v10 = vpack.c.bf16 %v265_v7, %v264_v6  ;;  %v259_v14 = vld [vmem:[%s1052_s30 + $0x8] sm:$0xff]  ;;  %s372_s14 = sshll.u32 %s257_s21, 4  ;;  %v271_v16 = vld [vmem:[#allocation7] sm:$0xff]  ;;  %s1077_s28 = scalar_lea.hbm %s1125_s4, %s540_s20  ;;  %s1072_s14 = int_to_ptr.vmem [resolvable:$true] %s372_s14 }
  0x89   : > { %526 = vmatpush3.bf16.msra.mxu0 %v523_v3  ;;  %270 = vst.msk [vmem:[%s257_s21] sm:$0x1] %vm269_vm1, %v268_v9  ;;  %v266_v11 = vld [vmem:[#allocation5 + $0x30] sm:$0xff]  ;;  %v272_v15 = vld [vmem:[#allocation7 + $0x8] sm:$0xff]  ;;  %s736_s11 = scalar_lea.vmem %s1072_s14, 384  ;;  %s818_s5 = smov [#allocation10]  }
  0x8a   : > { %528 = vmatprep.subr.bf16.mxu0 %v527_v5  ;;  %v535_v13 = vpack.c.bf16 %v267_v12, %v266_v11  ;;  %p737_p10 = scmp.ne.s32.totalorder %s1072_s14, %s736_s11  ;;  %s740_s27 = sshll.u32 %s818_s5, 4  ;;  %s741_s27 = int_to_ptr.vmem [resolvable:$false] %s740_s27 }
  0x8b   : > { %s742_s6 = scalar_lea.vmem %s741_s27, 768  ;;  %p743_p12 = scmp.lt.s32.totalorder %s1072_s14, %s741_s27 }
  0x8c   : > { %p738_p3 = pnand %p737_p10, %p997_p5  ;;  %p744_p1 = scmp.lt.s32.totalorder %s742_s6, %s736_s11 }
  0x8d   : > { %530 = vmatpush3.bf16.msra.mxu0 %v527_v5 }
  0x8e   : > { %532 = vmatprep.subr.bf16.mxu0 %v531_v10  ;;  %p739_p7 = pneg %p738_p3  ;;  %p745_p2 = por %p744_p1, %p743_p12 }
  0x90   : > { %p746_p4 = pnand %p745_p2, %p739_p7 }
  0x91   : > { %534 = vmatpush3.bf16.msra.mxu0 %v531_v10 }
  0x92   : > { %536 = vmatprep.subr.bf16.mxu0 %v535_v13 }
  0x95   : > { %538 = vmatpush3.bf16.msra.mxu0 %v535_v13 }
  0x98   : > { %521 = vmatmul.mubr.msk.f32.vlgmr.msra.gmra.mrb[0].mxu0 %vm273_vm0, %v259_v14 }
 0x16b   : > { %v522_v17 = vpop.f32.mrb[0].mxu0 }
 0x16c   : > { %v352_v18 = vadd.f32 %v522_v17, %v272_v15  ;;  %v346_v19 = vpop.f32.mrb[1].mxu0 }
 0x16d   : > { %v347_v20 = vadd.f32 %v346_v19, %v271_v16 }
 0x16e   : > { %357 = vst.msk [vmem:[%s257_s21 + $0x9] sm:$0xff] %vm355_vm2, %v352_v18 }
 0x16f   : > { %356 = vst.msk [vmem:[%s257_s21 + $0x1] sm:$0xff] %vm355_vm2, %v347_v20 }
 0x170   : > { %749 = shalt.err (!%p746_p4)
}
 0x171   : > { %s750_s8 = scalar_lea.hbm %s1077_s28, 384  ;;  %s754_s29 = scalar_lea.hbm %s1125_s4, 768 }
 0x172   : > { %p751_p9 = scmp.ne.s32.totalorder %s1077_s28, %s750_s8  ;;  %p755_p8 = scmp.lt.u32.totalorder %s1077_s28, %s1125_s4 }
 0x173   : > { %p756_p13 = scmp.lt.u32.totalorder %s754_s29, %s750_s8  ;;  %p758_p10 = scmp.lt.u32.totalorder %s750_s8, %s1077_s28 }
 0x174   : > { %p752_p0 = pnand %p751_p9, %p997_p5 }
 0x175   : > { %p757_p6 = por %p756_p13, %p755_p8 }
 0x176   : > { %p753_p11 = pneg %p752_p0 }
 0x177   : > { %p759_p3 = por %p758_p10, %p757_p6 }
 0x179   : > { %p760_p7 = pnand %p759_p3, %p753_p11 }
 0x17b   : > { %763 = shalt.err (!%p760_p7)
}
 0x17c   : > { %s819_s21 = smov 128   ;;  %s820_s20 = smov 8  }
 0x17d   : > { %555 = dma.vmem_to_hbm [thread:$0]  (%p997_p5), %s1072_s14, 384, %s1077_s28, %s359_s19, %s819_s21, %s819_s21, %s820_s20  }
 0x17e PF: > { %s387_s7 = sand.u32 1, %s798_s15   ;;  %p1143_p12 = scmp.ne.s32.totalorder %s1130_s22, 0 }
 0x17f   : > { %p1144_p1 = scmp.ge.s32.totalorder %s810_s18, 2  ;;  %s388_s9 = scalar_lea.sflag [#allocation4], %s387_s7 }
 0x181   : > { %p572_p2 = pnand %p1144_p1, %p1143_p12 }
 0x183   : > { %793 = dma.done.wait (!%p572_p2), %s388_s9, 384  }
 0x184   : > { %795 = vsyncadd (!%p572_p2), %s388_s9, 4294966912  ;;  %p19_p4 = scmp.ge.s32.totalorder %s983_s10, 4   ;;  %s1145_s15 = smov %s802_s16 }
 0x185   : > { %s1146_s16 = smov %s806_s17  ;;  %s1147_s17 = smov %s993_s13 }
 0x186   : > { %s1148_s18 = smov %s983_s10  ;;  %21 = sbr.rel (!%p19_p4) target bundleno = 7 (0x7), region = 93 }
 0x18d   :  { %393 = vsyncpa [#allocation3], 1 }
 0x18e   :  { %395 = vsyncpa [#allocation3 + $0x1], 1 }
 0x18f   :  { %396 = vsyncpa [#allocation6], 1 }
 0x190   :  { %397 = vsyncpa [#allocation9], 1 }
 0x191   :  { %398 = vsyncpa [#allocation4], 1 }
 0x192   :  { %400 = vsyncpa [#allocation4 + $0x1], 1 }

</bundles_post_ra>
